<compile_context>
chip_gen: v5e
topology: v5e:2x2
jax: 0.10.0
libtpu: 0.0.40
codegen_flags: <defaults>
</compile_context>

<pallas_src>
import jax
import jax.numpy as jnp
from jax.experimental import pallas as pl
from jax.experimental.pallas import tpu as pltpu

BN_EPS = 1e-5
_VMEM_BUDGET = 40 * 1024 * 1024      # conservative; fits v7x's 64 MiB physical VMEM


def _round_up(x, m):
    return ((x + m - 1) // m) * m


def _pick_tm(M):
    """Row tile: prefer big tiles, but keep >= 2 M-tiles so 2-TC chips (v7x)
    and megacore sharding have parallel work; tiny problems use one 8-aligned tile."""
    for cand in (512, 256, 128):
        if M >= 2 * cand:
            return cand
    return max(_round_up(M, 8), 8)


def _pick_apply_tile(Mp):
    """Kernel-2 row tile: purely bandwidth bound, go wide but keep >= 2 steps."""
    for cand in (1024, 512, 256, 128):
        if Mp % cand == 0 and Mp // cand >= 2:
            return cand
    return Mp


def _im2col(x_nhwc, kh, kw, stride, padding, dilation):
    """Channels-last patch extraction. Returns (N, OH, OW, kh*kw*Cin), OH, OW."""
    sh, sw = stride
    ph, pw = padding
    dh, dw = dilation
    if ph or pw:
        x_nhwc = jnp.pad(x_nhwc, ((0, 0), (ph, ph), (pw, pw), (0, 0)))
    _, H, W, _ = x_nhwc.shape
    OH = (H - dh * (kh - 1) - 1) // sh + 1
    OW = (W - dw * (kw - 1) - 1) // sw + 1
    cols = []
    for i in range(kh):
        for j in range(kw):
            cols.append(
                x_nhwc[:, i * dh: i * dh + (OH - 1) * sh + 1: sh,
                          j * dw: j * dw + (OW - 1) * sw + 1: sw, :])
    patches = jnp.concatenate(cols, axis=-1)   # K order: (kh, kw, cin)
    return patches, OH, OW


def conv2d_bn(x, weight, bias, bn_gamma, bn_beta,
              stride=(1, 1), padding=(0, 0), dilation=(1, 1), *, eps=BN_EPS):
    """x: (N, Cin, H, W); weight: (Cout, Cin, KH, KW); bias/gamma/beta: (Cout,)."""
    N, Cin, H, W = x.shape
    Cout, Cin_w, KH, KW = weight.shape
    assert Cin == Cin_w, "groups != 1 not supported"  # TODO(synk): grouped conv

    # ---- im2col in channels-last layout (cheap XLA slices, fused under jit) ----
    x_nhwc = jnp.transpose(x, (0, 2, 3, 1))                       # (N, H, W, Cin)
    patches, OH, OW = _im2col(x_nhwc, KH, KW, stride, padding, dilation)
    M = N * OH * OW
    Kdim = KH * KW * Cin

    Cp = _round_up(Cout, 128)          # lane-dense channel axis
    tm = _pick_tm(M)
    Mp = _round_up(M, tm)
    n_m = Mp // tm

    # Keep the full contraction resident (weight DMA'd once, no K grid axis)
    # whenever it comfortably fits; otherwise stream K in 512-wide slabs.
    Kp = _round_up(Kdim, 128)
    single_k_bytes = (2 * tm * Kp * 2        # patches tile, double buffered, bf16
                      + 2 * Kp * Cp * 2      # weight (constant index -> DMA'd once)
                      + 2 * tm * Cp * 2      # bf16 y tile out
                      + 2 * 2 * Cp * 4)      # stats tiles
    single_k = single_k_bytes <= _VMEM_BUDGET
    if single_k:
        tk, n_k = Kp, 1
    else:
        tk = 512
        Kp = _round_up(Kdim, tk)
        n_k = Kp // tk

    # bf16 MXU feeds (f32 accumulation inside the dot).
    patches2d = jnp.pad(patches.reshape(M, Kdim).astype(jnp.bfloat16),
                        ((0, Mp - M), (0, Kp - Kdim)))
    w2d = jnp.transpose(weight, (2, 3, 1, 0)).reshape(Kdim, Cout)   # (kh,kw,cin)->rows
    w2d = jnp.pad(w2d.astype(jnp.bfloat16), ((0, Kp - Kdim), (0, Cp - Cout)))

    # NOTE: `bias` is intentionally NOT applied.  A per-channel constant added
    # before training-mode BatchNorm cancels exactly (the batch mean absorbs it
    # and the variance is unchanged), so the module output is unaffected.  This
    # also makes zero-padded rows/channels contribute exactly 0 to the BN sums.

    # ---- kernel 1: conv matmul + fused BN partial statistics -------------------
    def conv_stats_kernel(p_ref, w_ref, y_ref, st_ref):
        y = jnp.dot(p_ref[...], w_ref[...], preferred_element_type=jnp.float32)
        y_ref[...] = y.astype(y_ref.dtype)
        s = jnp.sum(y, axis=0, keepdims=True)             # (1, Cp) f32
        s2 = jnp.sum(y * y, axis=0, keepdims=True)        # (1, Cp) f32
        st_ref[...] = jnp.concatenate([s, s2], axis=0)[None]   # (1, 2, Cp)

    def conv_stats_kernel_kloop(p_ref, w_ref, y_ref, st_ref, acc_ref):
        # program_id bound once at top level (never inside a pl.when body).
        k = pl.program_id(1)

        @pl.when(k == 0)
        def _init():
            acc_ref[...] = jnp.zeros_like(acc_ref)

        acc_ref[...] += jnp.dot(p_ref[...], w_ref[...],
                                preferred_element_type=jnp.float32)

        @pl.when(k == n_k - 1)
        def _finalize():
            y = acc_ref[...]
            y_ref[...] = y.astype(y_ref.dtype)
            s = jnp.sum(y, axis=0, keepdims=True)
            s2 = jnp.sum(y * y, axis=0, keepdims=True)
            st_ref[...] = jnp.concatenate([s, s2], axis=0)[None]

    y_shape = jax.ShapeDtypeStruct((Mp, Cp), jnp.bfloat16)
    st_shape = jax.ShapeDtypeStruct((n_m, 2, Cp), jnp.float32)

    if single_k:
        kernel = conv_stats_kernel
        grid = (n_m,)
        in_specs = [
            pl.BlockSpec((tm, Kp), lambda i: (i, 0)),
            pl.BlockSpec((Kp, Cp), lambda i: (0, 0)),     # resident weight
        ]
        out_specs = [
            pl.BlockSpec((tm, Cp), lambda i: (i, 0)),
            pl.BlockSpec((1, 2, Cp), lambda i: (i, 0, 0)),
        ]
        scratch = []
        dims = ("parallel",)
        weight_bytes = Kp * Cp * 2                        # fetched once
    else:
        kernel = conv_stats_kernel_kloop
        grid = (n_m, n_k)
        in_specs = [
            pl.BlockSpec((tm, tk), lambda i, k: (i, k)),
            pl.BlockSpec((tk, Cp), lambda i, k: (k, 0)),
        ]
        out_specs = [
            pl.BlockSpec((tm, Cp), lambda i, k: (i, 0)),
            pl.BlockSpec((1, 2, Cp), lambda i, k: (i, 0, 0)),
        ]
        scratch = [pltpu.VMEM((tm, Cp), jnp.float32)]
        dims = ("parallel", "arbitrary")
        weight_bytes = n_m * Kp * Cp * 2                  # streamed per M tile

    cost1 = pl.CostEstimate(
        flops=2 * Mp * Kp * Cp,
        transcendentals=0,
        bytes_accessed=Mp * Kp * 2 + weight_bytes + Mp * Cp * 2 + n_m * 2 * Cp * 4)

    y2d, stats = pl.pallas_call(
        kernel,
        out_shape=(y_shape, st_shape),
        grid_spec=pltpu.PrefetchScalarGridSpec(
            num_scalar_prefetch=0,
            grid=grid,
            in_specs=in_specs,
            out_specs=out_specs,
            scratch_shapes=scratch),
        compiler_params=pltpu.CompilerParams(
            dimension_semantics=dims,
            vmem_limit_bytes=48 * 1024 * 1024),
        cost_estimate=cost1,
    )(patches2d, w2d)

    # ---- tiny cross-tile stats reduction + affine folding (plain XLA) ----------
    cnt = float(M)
    ssum = jnp.sum(stats[:, 0, :], axis=0)
    ssq = jnp.sum(stats[:, 1, :], axis=0)
    mean = ssum / cnt
    var = jnp.maximum(ssq / cnt - mean * mean, 0.0)       # biased var (PyTorch BN fwd)
    inv = jax.lax.rsqrt(var + eps)
    gamma_p = jnp.pad(bn_gamma, (0, Cp - Cout), constant_values=1.0)
    beta_p = jnp.pad(bn_beta, (0, Cp - Cout))
    scale = (gamma_p * inv).reshape(1, Cp).astype(jnp.float32)
    shift = (beta_p - mean * gamma_p * inv).reshape(1, Cp).astype(jnp.float32)

    # ---- kernel 2: apply y*scale + shift, lane-dense, bandwidth-bound ----------
    tm2 = _pick_apply_tile(Mp)
    n_m2 = Mp // tm2

    def bn_apply_kernel(y_ref, sc_ref, sh_ref, o_ref):
        y = y_ref[...].astype(jnp.float32)
        o_ref[...] = (y * sc_ref[...] + sh_ref[...]).astype(o_ref.dtype)

    out2d = pl.pallas_call(
        bn_apply_kernel,
        out_shape=jax.ShapeDtypeStruct((Mp, Cp), x.dtype),
        grid_spec=pltpu.PrefetchScalarGridSpec(
            num_scalar_prefetch=0,
            grid=(n_m2,),
            in_specs=[
                pl.BlockSpec((tm2, Cp), lambda i: (i, 0)),
                pl.BlockSpec((1, Cp), lambda i: (0, 0)),
                pl.BlockSpec((1, Cp), lambda i: (0, 0)),
            ],
            out_specs=pl.BlockSpec((tm2, Cp), lambda i: (i, 0))),
        compiler_params=pltpu.CompilerParams(
            dimension_semantics=("parallel",),
            vmem_limit_bytes=32 * 1024 * 1024),
        cost_estimate=pl.CostEstimate(
            flops=2 * Mp * Cp, transcendentals=0,
            bytes_accessed=Mp * Cp * 2 + Mp * Cp * 4 + 2 * Cp * 4 * 2),
    )(y2d, scale, shift)

    # Strip padding and convert back to the module's NCHW output layout.
    out = out2d[:M, :Cout].reshape(N, OH, OW, Cout)
    return jnp.transpose(out, (0, 3, 1, 2))


def _reference(x, weight, bias, bn_gamma, bn_beta,
               stride=(1, 1), padding=(0, 0), dilation=(1, 1)):
    y = jax.lax.conv_general_dilated(
        x, weight, window_strides=stride,
        padding=[(padding[0], padding[0]), (padding[1], padding[1])],
        rhs_dilation=dilation,
        dimension_numbers=("NCHW", "OIHW", "NCHW"))
    y = y + bias.reshape(1, -1, 1, 1)
    mean = jnp.mean(y, axis=(0, 2, 3), keepdims=True)
    var = jnp.mean((y - mean) ** 2, axis=(0, 2, 3), keepdims=True)
    g = bn_gamma.reshape(1, -1, 1, 1)
    b = bn_beta.reshape(1, -1, 1, 1)
    return (y - mean) * jax.lax.rsqrt(var + BN_EPS) * g + b


if __name__ == "__main__":
    # Small shapes: batch=2, in_channels=4, spatial=16x16, out_channels=8, 3x3 conv.
    N, Cin, Himg, Wimg = 2, 4, 16, 16
    Cout, KH, KW = 8, 3, 3

    key = jax.random.PRNGKey(0)
    kx, kw, kb, kg, kbe = jax.random.split(key, 5)
    x = jax.random.normal(kx, (N, Cin, Himg, Wimg), dtype=jnp.float32)
    weight = jax.random.normal(kw, (Cout, Cin, KH, KW), dtype=jnp.float32) * 0.1
    bias = jax.random.normal(kb, (Cout,), dtype=jnp.float32) * 0.1
    bn_gamma = 1.0 + 0.1 * jax.random.normal(kg, (Cout,), dtype=jnp.float32)
    bn_beta = 0.1 * jax.random.normal(kbe, (Cout,), dtype=jnp.float32)

    fn = jax.jit(conv2d_bn)
    out = jax.block_until_ready(fn(x, weight, bias, bn_gamma, bn_beta))

    ref = _reference(x, weight, bias, bn_gamma, bn_beta)
    OH, OW = Himg - KH + 1, Wimg - KW + 1
    assert out.shape == (N, Cout, OH, OW), out.shape
    # Tolerance accounts for bf16 MXU feeds (BN-normalized outputs are O(1)).
    assert jnp.allclose(out, ref, atol=3e-2, rtol=3e-2), "mismatch vs reference"

    print("KERNEL_OK")
</pallas_src>

<mosaic_0001>
module attributes {stable_mosaic.version = 11 : i64} {
  func.func @conv_stats_kernel(%arg0: i32, %arg1: memref<128x128xbf16, #tpu.memory_space<vmem>>, %arg2: memref<128x128xbf16, #tpu.memory_space<vmem>>, %arg3: memref<128x128xbf16, #tpu.memory_space<vmem>>, %arg4: memref<1x2x128xf32, #tpu.memory_space<vmem>>) attributes {dimension_semantics = [#tpu.dimension_semantics<parallel>], iteration_bounds = array<i64: 4>, scalar_prefetch = 0 : i64, scratch_operands = 0 : i64, tpu.core_type = #tpu.core_type<tc>, window_params = [{transform_indices = @transform_0, window_bounds = array<i64: 128, 128>}, {pipeline_mode = #tpu.pipeline_mode<synchronous>, transform_indices = @transform_1, window_bounds = array<i64: 128, 128>}, {transform_indices = @transform_2, window_bounds = array<i64: 128, 128>}, {transform_indices = @transform_3, window_bounds = array<i64: 1, 2, 128>}]} {
    %c0 = arith.constant 0 : index
    %c0_0 = arith.constant 0 : index
    %0 = vector.load %arg1[%c0, %c0_0] : memref<128x128xbf16, #tpu.memory_space<vmem>>, vector<128x128xbf16>
    %c0_1 = arith.constant 0 : index
    %c0_2 = arith.constant 0 : index
    %1 = vector.load %arg2[%c0_1, %c0_2] : memref<128x128xbf16, #tpu.memory_space<vmem>>, vector<128x128xbf16>
    %cst = arith.constant dense<0.000000e+00> : vector<128x128xf32>
    %2 = tpu.matmul %0, %1, %cst {dimension_numbers = #tpu.dot_dimension_numbers<[1], [0], [0], [1], [0, 0, 1, 1], [], []>} : vector<128x128xbf16>, vector<128x128xbf16>, vector<128x128xf32> -> vector<128x128xf32>
    %3 = arith.truncf %2 : vector<128x128xf32> to vector<128x128xbf16>
    %c0_3 = arith.constant 0 : index
    %c0_4 = arith.constant 0 : index
    %4 = vector.load %arg3[%c0_3, %c0_4] : memref<128x128xbf16, #tpu.memory_space<vmem>>, vector<128x128xbf16>
    tpu.vector_store %arg3[%c0_3, %c0_4], %3 {strides = array<i32>} : memref<128x128xbf16, #tpu.memory_space<vmem>>, vector<128x128xbf16>,
    %cst_5 = arith.constant dense<0.000000e+00> : vector<128xf32>
    %5 = vector.multi_reduction <add>, %2, %cst_5 [0] : vector<128x128xf32> to vector<128xf32>
    %6 = vector.shape_cast %5 : vector<128xf32> to vector<1x128xf32>
    %7 = arith.mulf %2, %2 : vector<128x128xf32>
    %cst_6 = arith.constant dense<0.000000e+00> : vector<128xf32>
    %8 = vector.multi_reduction <add>, %7, %cst_6 [0] : vector<128x128xf32> to vector<128xf32>
    %9 = vector.shape_cast %8 : vector<128xf32> to vector<1x128xf32>
    %10 = tpu.concatenate %6, %9 in 0 : vector<1x128xf32>, vector<1x128xf32> -> vector<2x128xf32>
    %11 = vector.shape_cast %10 : vector<2x128xf32> to vector<1x2x128xf32>
    %c0_7 = arith.constant 0 : index
    %c0_8 = arith.constant 0 : index
    %c0_9 = arith.constant 0 : index
    %12 = vector.load %arg4[%c0_7, %c0_8, %c0_9] : memref<1x2x128xf32, #tpu.memory_space<vmem>>, vector<1x2x128xf32>
    tpu.vector_store %arg4[%c0_7, %c0_8, %c0_9], %11 {strides = array<i32>} : memref<1x2x128xf32, #tpu.memory_space<vmem>>, vector<1x2x128xf32>,
    return
  }
  func.func @transform_0(%arg0: i32) -> (i32, i32) {
    %c0_i32 = arith.constant 0 : i32
    %c0_i32_0 = arith.constant 0 : i32
    return %arg0, %c0_i32 : i32, i32
  }
  func.func @transform_1(%arg0: i32) -> (i32, i32) {
    %c0_i32 = arith.constant 0 : i32
    %c0_i32_0 = arith.constant 0 : i32
    %c0_i32_1 = arith.constant 0 : i32
    return %c0_i32, %c0_i32_0 : i32, i32
  }
  func.func @transform_2(%arg0: i32) -> (i32, i32) {
    %c0_i32 = arith.constant 0 : i32
    %c0_i32_0 = arith.constant 0 : i32
    return %arg0, %c0_i32 : i32, i32
  }
  func.func @transform_3(%arg0: i32) -> (i32, i32, i32) {
    %c0_i32 = arith.constant 0 : i32
    %c0_i32_0 = arith.constant 0 : i32
    %c0_i32_1 = arith.constant 0 : i32
    return %arg0, %c0_i32, %c0_i32_0 : i32, i32, i32
  }
}

module attributes {stable_mosaic.version = 11 : i64} {
  func.func @bn_apply_kernel(%arg0: i32, %arg1: memref<256x128xbf16, #tpu.memory_space<vmem>>, %arg2: memref<1x128xf32, #tpu.memory_space<vmem>>, %arg3: memref<1x128xf32, #tpu.memory_space<vmem>>, %arg4: memref<256x128xf32, #tpu.memory_space<vmem>>) attributes {dimension_semantics = [#tpu.dimension_semantics<parallel>], iteration_bounds = array<i64: 2>, scalar_prefetch = 0 : i64, scratch_operands = 0 : i64, tpu.core_type = #tpu.core_type<tc>, window_params = [{transform_indices = @transform_0, window_bounds = array<i64: 256, 128>}, {pipeline_mode = #tpu.pipeline_mode<synchronous>, transform_indices = @transform_1, window_bounds = array<i64: 1, 128>}, {pipeline_mode = #tpu.pipeline_mode<synchronous>, transform_indices = @transform_2, window_bounds = array<i64: 1, 128>}, {transform_indices = @transform_3, window_bounds = array<i64: 256, 128>}]} {
    %c0 = arith.constant 0 : index
    %c0_0 = arith.constant 0 : index
    %0 = vector.load %arg1[%c0, %c0_0] : memref<256x128xbf16, #tpu.memory_space<vmem>>, vector<256x128xbf16>
    %1 = arith.extf %0 : vector<256x128xbf16> to vector<256x128xf32>
    %c0_1 = arith.constant 0 : index
    %c0_2 = arith.constant 0 : index
    %2 = vector.load %arg2[%c0_1, %c0_2] : memref<1x128xf32, #tpu.memory_space<vmem>>, vector<1x128xf32>
    %3 = vector.broadcast %2 : vector<1x128xf32> to vector<256x128xf32>
    %4 = arith.mulf %1, %3 : vector<256x128xf32>
    %c0_3 = arith.constant 0 : index
    %c0_4 = arith.constant 0 : index
    %5 = vector.load %arg3[%c0_3, %c0_4] : memref<1x128xf32, #tpu.memory_space<vmem>>, vector<1x128xf32>
    %6 = vector.broadcast %5 : vector<1x128xf32> to vector<256x128xf32>
    %7 = arith.addf %4, %6 : vector<256x128xf32>
    %c0_5 = arith.constant 0 : index
    %c0_6 = arith.constant 0 : index
    %8 = vector.load %arg4[%c0_5, %c0_6] : memref<256x128xf32, #tpu.memory_space<vmem>>, vector<256x128xf32>
    tpu.vector_store %arg4[%c0_5, %c0_6], %7 {strides = array<i32>} : memref<256x128xf32, #tpu.memory_space<vmem>>, vector<256x128xf32>,
    return
  }
  func.func @transform_0(%arg0: i32) -> (i32, i32) {
    %c0_i32 = arith.constant 0 : i32
    %c0_i32_0 = arith.constant 0 : i32
    return %arg0, %c0_i32 : i32, i32
  }
  func.func @transform_1(%arg0: i32) -> (i32, i32) {
    %c0_i32 = arith.constant 0 : i32
    %c0_i32_0 = arith.constant 0 : i32
    %c0_i32_1 = arith.constant 0 : i32
    return %c0_i32, %c0_i32_0 : i32, i32
  }
  func.func @transform_2(%arg0: i32) -> (i32, i32) {
    %c0_i32 = arith.constant 0 : i32
    %c0_i32_0 = arith.constant 0 : i32
    %c0_i32_1 = arith.constant 0 : i32
    return %c0_i32, %c0_i32_0 : i32, i32
  }
  func.func @transform_3(%arg0: i32) -> (i32, i32) {
    %c0_i32 = arith.constant 0 : i32
    %c0_i32_0 = arith.constant 0 : i32
    return %arg0, %c0_i32 : i32, i32
  }
}

</mosaic_0001>

<bundles_post_ra>
// kernel: conv2d_bn.3
= control target key start
LH: loop header
LB: loop body
LE: loop exit
PB: predicated region body
PF: predicated region fallthrough
CT: control target
= control target key end

     0   :  { %s526_s12 = smov 0   ;;  %s669_s0 = inlined_call_operand.vmem [shape: bf16[512,128], index: 0, kind: input, shape index: {}]   ;;  %s670_s1 = inlined_call_operand.vmem [shape: f32[1,128], index: 1, kind: input, shape index: {}]   ;;  %s671_s2 = inlined_call_operand.vmem [shape: f32[1,128], index: 2, kind: input, shape index: {}]   ;;  %s672_s3 = inlined_call_operand.vmem [shape: f32[512,128], index: 3, kind: output, shape index: {}]  }
   0x1 LB: > { %s398_s13 = sadd.s32 4294967295, %s504_s12   ;;  %p402_p0 = scmp.ge.s32.totalorder %s504_s12, 1  ;;  %s504_s12 = sphi %s526_s12, %s13_s12  }
   0x2   : > { %p138_p1 = scmp.lt.s32.totalorder %s504_s12, 3 }
   0x4   : > { %p139_p2 = pnand %p402_p0, %p138_p1 }
   0x5   : > { %s403_s14 = sshll.u32 (!%p139_p2), %s398_s13, 5 }
   0x6   : > { %142 = sbr.rel (%p139_p2) target bundleno = 53 (0x35), region = 32  ;;  %p163_p3 = scmp.lt.s32.totalorder (!%p139_p2), %s403_s14, 63 }
   0xb   : > { %s674_s14 = smov (!%p163_p3, %s403_s14), 63  ;;  %v542_v0 = vld [vmem:[%s670_s1] ss:$0 sm:$0xff] }
   0xc   : > { %s404_s15 = sshll.u32 %s674_s14, 2  ;;  %s406_s21 = sshll.u32 %s674_s14, 3  ;;  %v550_v5 = vld [vmem:[%s671_s2] ss:$0 sm:$0xff] }
   0xd   : > { %s537_s18 = scalar_lea.vmem %s669_s0, %s404_s15  ;;  %s560_s26 = scalar_lea.vmem %s672_s3, %s406_s21 }
   0xe   : > { %v410_v1 = vld [vmem:[%s537_s18] sm:$0xff]   ;;  %v473_v2 = vld [vmem:[%s537_s18 + $0x8] sm:$0xff]   ;;  %v474_v3 = vld [vmem:[%s537_s18 + $0x10] sm:$0xff]  }
   0xf   : > { %v411_v4 = vunpack.c.l.bf16 %v410_v1  ;;  %v412_v6 = vunpack.c.h.bf16 %v410_v1  ;;  %v415_v7 = vunpack.c.l.bf16 %v473_v2  ;;  %v416_v8 = vunpack.c.h.bf16 %v473_v2  ;;  %v475_v9 = vld [vmem:[%s537_s18 + $0x18] sm:$0xff]   ;;  %v476_v20 = vld [vmem:[%s537_s18 + $0x20] sm:$0xff]   ;;  %v477_v21 = vld [vmem:[%s537_s18 + $0x28] sm:$0xff]  }
  0x10   : > { %v419_v10 = vunpack.c.l.bf16 %v474_v3  ;;  %v420_v11 = vunpack.c.h.bf16 %v474_v3  ;;  %v423_v12 = vunpack.c.l.bf16 %v475_v9  ;;  %v424_v13 = vunpack.c.h.bf16 %v475_v9  ;;  %v478_v26 = vld [vmem:[%s537_s18 + $0x30] sm:$0xff]   ;;  %v479_v27 = vld [vmem:[%s537_s18 + $0x38] sm:$0xff]   ;;  %v480_v46 = vld [vmem:[%s537_s18 + $0x40] sm:$0xff]  }
  0x11   : > { %v242_v14 = vmul.f32 %v542_v0, %v411_v4  ;;  %v243_v15 = vmul.f32 %v542_v0, %v412_v6  ;;  %v244_v16 = vmul.f32 %v542_v0, %v415_v7  ;;  %v245_v17 = vmul.f32 %v542_v0, %v416_v8  ;;  %v481_v47 = vld [vmem:[%s537_s18 + $0x48] sm:$0xff]   ;;  %v482_v53 = vld [vmem:[%s537_s18 + $0x50] sm:$0xff]   ;;  %v483_v61 = vld [vmem:[%s537_s18 + $0x58] sm:$0xff]  }
  0x12   : > { %v246_v18 = vmul.f32 %v542_v0, %v419_v10  ;;  %v247_v19 = vmul.f32 %v542_v0, %v420_v11  ;;  %v248_v25 = vmul.f32 %v542_v0, %v423_v12  ;;  %v249_v30 = vmul.f32 %v542_v0, %v424_v13  ;;  %v484_v6 = vld [vmem:[%s537_s18 + $0x60] sm:$0xff]   ;;  %v485_v13 = vld [vmem:[%s537_s18 + $0x68] sm:$0xff]  }
  0x13   : > { %v278_v22 = vadd.f32 %v550_v5, %v242_v14  ;;  %v279_v23 = vadd.f32 %v550_v5, %v243_v15  ;;  %v280_v24 = vadd.f32 %v550_v5, %v244_v16  ;;  %v281_v28 = vadd.f32 %v550_v5, %v245_v17 }
  0x14   : > { %v282_v29 = vadd.f32 %v550_v5, %v246_v18  ;;  %v427_v31 = vunpack.c.l.bf16 %v476_v20  ;;  %v428_v32 = vunpack.c.h.bf16 %v476_v20  ;;  %v431_v33 = vunpack.c.l.bf16 %v477_v21  ;;  %v486_v20 = vld [vmem:[%s537_s18 + $0x70] sm:$0xff]  }
  0x15   : > { %310 = vst [vmem:[%s560_s26] sm:$0xff] %v278_v22  ;;  %v432_v34 = vunpack.c.h.bf16 %v477_v21  ;;  %v283_v35 = vadd.f32 %v550_v5, %v247_v19  ;;  %v435_v36 = vunpack.c.l.bf16 %v478_v26  ;;  %v436_v37 = vunpack.c.h.bf16 %v478_v26 }
  0x16   : > { %311 = vst [vmem:[%s560_s26 + $0x8] sm:$0xff] %v279_v23  ;;  %v439_v38 = vunpack.c.l.bf16 %v479_v27  ;;  %v284_v39 = vadd.f32 %v550_v5, %v248_v25  ;;  %v250_v40 = vmul.f32 %v542_v0, %v427_v31  ;;  %v251_v41 = vmul.f32 %v542_v0, %v428_v32 }
  0x17   : > { %312 = vst [vmem:[%s560_s26 + $0x10] sm:$0xff] %v280_v24  ;;  %v252_v42 = vmul.f32 %v542_v0, %v431_v33  ;;  %v285_v43 = vadd.f32 %v550_v5, %v249_v30  ;;  %v253_v44 = vmul.f32 %v542_v0, %v432_v34  ;;  %v440_v45 = vunpack.c.h.bf16 %v479_v27  ;;  %v487_v27 = vld [vmem:[%s537_s18 + $0x78] sm:$0xff]  }
  0x18   : > { %313 = vst [vmem:[%s560_s26 + $0x18] sm:$0xff] %v281_v28  ;;  %v286_v48 = vadd.f32 %v550_v5, %v250_v40  ;;  %v254_v49 = vmul.f32 %v542_v0, %v435_v36  ;;  %v287_v50 = vadd.f32 %v550_v5, %v251_v41  ;;  %v255_v51 = vmul.f32 %v542_v0, %v436_v37 }
  0x19   : > { %314 = vst [vmem:[%s560_s26 + $0x20] sm:$0xff] %v282_v29  ;;  %v256_v52 = vmul.f32 %v542_v0, %v439_v38  ;;  %v288_v54 = vadd.f32 %v550_v5, %v252_v42  ;;  %v443_v55 = vunpack.c.l.bf16 %v480_v46  ;;  %v444_v56 = vunpack.c.h.bf16 %v480_v46 }
  0x1a   : > { %315 = vst [vmem:[%s560_s26 + $0x28] sm:$0xff] %v283_v35  ;;  %v447_v57 = vunpack.c.l.bf16 %v481_v47  ;;  %v289_v58 = vadd.f32 %v550_v5, %v253_v44  ;;  %v257_v59 = vmul.f32 %v542_v0, %v440_v45  ;;  %v448_v60 = vunpack.c.h.bf16 %v481_v47 }
  0x1b   : > { %316 = vst [vmem:[%s560_s26 + $0x30] sm:$0xff] %v284_v39  ;;  %v290_v62 = vadd.f32 %v550_v5, %v254_v49  ;;  %v258_v63 = vmul.f32 %v542_v0, %v443_v55  ;;  %v451_v1 = vunpack.c.l.bf16 %v482_v53  ;;  %v291_v2 = vadd.f32 %v550_v5, %v255_v51 }
  0x1c   : > { %317 = vst [vmem:[%s560_s26 + $0x38] sm:$0xff] %v285_v43  ;;  %v259_v3 = vmul.f32 %v542_v0, %v444_v56  ;;  %v452_v4 = vunpack.c.h.bf16 %v482_v53  ;;  %v292_v7 = vadd.f32 %v550_v5, %v256_v52  ;;  %v260_v8 = vmul.f32 %v542_v0, %v447_v57 }
  0x1d   : > { %318 = vst [vmem:[%s560_s26 + $0x40] sm:$0xff] %v286_v48  ;;  %v455_v9 = vunpack.c.l.bf16 %v483_v61  ;;  %v293_v10 = vadd.f32 %v550_v5, %v257_v59  ;;  %v261_v11 = vmul.f32 %v542_v0, %v448_v60  ;;  %v456_v12 = vunpack.c.h.bf16 %v483_v61 }
  0x1e   : > { %319 = vst [vmem:[%s560_s26 + $0x48] sm:$0xff] %v287_v50  ;;  %v294_v14 = vadd.f32 %v550_v5, %v258_v63  ;;  %v262_v15 = vmul.f32 %v542_v0, %v451_v1  ;;  %v459_v16 = vunpack.c.l.bf16 %v484_v6  ;;  %v295_v17 = vadd.f32 %v550_v5, %v259_v3 }
  0x1f   : > { %320 = vst [vmem:[%s560_s26 + $0x50] sm:$0xff] %v288_v54  ;;  %v263_v18 = vmul.f32 %v542_v0, %v452_v4  ;;  %v460_v19 = vunpack.c.h.bf16 %v484_v6  ;;  %v296_v21 = vadd.f32 %v550_v5, %v260_v8  ;;  %v264_v22 = vmul.f32 %v542_v0, %v455_v9 }
  0x20   : > { %321 = vst [vmem:[%s560_s26 + $0x58] sm:$0xff] %v289_v58  ;;  %v463_v23 = vunpack.c.l.bf16 %v485_v13  ;;  %v297_v24 = vadd.f32 %v550_v5, %v261_v11  ;;  %v265_v25 = vmul.f32 %v542_v0, %v456_v12  ;;  %v464_v26 = vunpack.c.h.bf16 %v485_v13 }
  0x21   : > { %322 = vst [vmem:[%s560_s26 + $0x60] sm:$0xff] %v290_v62  ;;  %v298_v28 = vadd.f32 %v550_v5, %v262_v15  ;;  %v266_v29 = vmul.f32 %v542_v0, %v459_v16  ;;  %v467_v30 = vunpack.c.l.bf16 %v486_v20  ;;  %v299_v31 = vadd.f32 %v550_v5, %v263_v18 }
  0x22   : > { %323 = vst [vmem:[%s560_s26 + $0x68] sm:$0xff] %v291_v2  ;;  %v267_v32 = vmul.f32 %v542_v0, %v460_v19  ;;  %v468_v33 = vunpack.c.h.bf16 %v486_v20  ;;  %v300_v34 = vadd.f32 %v550_v5, %v264_v22  ;;  %v268_v35 = vmul.f32 %v542_v0, %v463_v23 }
  0x23   : > { %324 = vst [vmem:[%s560_s26 + $0x70] sm:$0xff] %v292_v7  ;;  %v471_v36 = vunpack.c.l.bf16 %v487_v27  ;;  %v301_v37 = vadd.f32 %v550_v5, %v265_v25  ;;  %v269_v38 = vmul.f32 %v542_v0, %v464_v26  ;;  %v472_v39 = vunpack.c.h.bf16 %v487_v27 }
  0x24   : > { %325 = vst [vmem:[%s560_s26 + $0x78] sm:$0xff] %v293_v10  ;;  %v302_v40 = vadd.f32 %v550_v5, %v266_v29  ;;  %v270_v41 = vmul.f32 %v542_v0, %v467_v30  ;;  %v303_v42 = vadd.f32 %v550_v5, %v267_v32  ;;  %v271_v43 = vmul.f32 %v542_v0, %v468_v33 }
  0x25   : > { %326 = vst [vmem:[%s560_s26 + $0x80] sm:$0xff] %v294_v14  ;;  %v304_v44 = vadd.f32 %v550_v5, %v268_v35  ;;  %v272_v45 = vmul.f32 %v542_v0, %v471_v36  ;;  %v305_v46 = vadd.f32 %v550_v5, %v269_v38  ;;  %v273_v47 = vmul.f32 %v542_v0, %v472_v39 }
  0x26   : > { %327 = vst [vmem:[%s560_s26 + $0x88] sm:$0xff] %v295_v17  ;;  %v306_v48 = vadd.f32 %v550_v5, %v270_v41  ;;  %v307_v49 = vadd.f32 %v550_v5, %v271_v43 }
  0x27   : > { %328 = vst [vmem:[%s560_s26 + $0x90] sm:$0xff] %v296_v21  ;;  %v308_v50 = vadd.f32 %v550_v5, %v272_v45  ;;  %v309_v51 = vadd.f32 %v550_v5, %v273_v47 }
  0x28   : > { %329 = vst [vmem:[%s560_s26 + $0x98] sm:$0xff] %v297_v24 }
  0x29   : > { %330 = vst [vmem:[%s560_s26 + $0xa0] sm:$0xff] %v298_v28 }
  0x2a   : > { %331 = vst [vmem:[%s560_s26 + $0xa8] sm:$0xff] %v299_v31 }
  0x2b   : > { %332 = vst [vmem:[%s560_s26 + $0xb0] sm:$0xff] %v300_v34 }
  0x2c   : > { %333 = vst [vmem:[%s560_s26 + $0xb8] sm:$0xff] %v301_v37 }
  0x2d   : > { %334 = vst [vmem:[%s560_s26 + $0xc0] sm:$0xff] %v302_v40 }
  0x2e   : > { %335 = vst [vmem:[%s560_s26 + $0xc8] sm:$0xff] %v303_v42 }
  0x2f   : > { %336 = vst [vmem:[%s560_s26 + $0xd0] sm:$0xff] %v304_v44 }
  0x30   : > { %337 = vst [vmem:[%s560_s26 + $0xd8] sm:$0xff] %v305_v46 }
  0x31   : > { %338 = vst [vmem:[%s560_s26 + $0xe0] sm:$0xff] %v306_v48 }
  0x32   : > { %339 = vst [vmem:[%s560_s26 + $0xe8] sm:$0xff] %v307_v49 }
  0x33   : > { %340 = vst [vmem:[%s560_s26 + $0xf0] sm:$0xff] %v308_v50 }
  0x34   : > { %341 = vst [vmem:[%s560_s26 + $0xf8] sm:$0xff] %v309_v51 }
  0x35 PF: > { %s13_s12 = sadd.s32 1, %s504_s12  }
  0x36   : > { %p10_p4 = scmp.ge.s32.totalorder %s13_s12, 4  }
  0x38   :  { %12 = sbr.rel (!%p10_p4) target bundleno = 1 (0x1), region = 62 }

// kernel: conv2d_bn.2
= control target key start
LH: loop header
LB: loop body
LE: loop exit
PB: predicated region body
PF: predicated region fallthrough
CT: control target
= control target key end

     0   :  { %s741_s12 = smov 0   ;;  %s813_s0 = inlined_call_operand.vmem [shape: bf16[512,128], index: 0, kind: input, shape index: {}]   ;;  %s814_s1 = inlined_call_operand.vmem [shape: bf16[128,128], index: 1, kind: input, shape index: {}]   ;;  %s815_s2 = inlined_call_operand.vmem [shape: bf16[512,128], index: 2, kind: output, shape index: {0}]   ;;  %s816_s3 = inlined_call_operand.vmem [shape: f32[4,2,128], index: 3, kind: output, shape index: {1}]  }
   0x1 LB: > { %s747_s13 = sadd.s32 4294967295, %s719_s12   ;;  %p546_p0 = scmp.ge.s32.totalorder %s719_s12, 1  ;;  %s719_s12 = sphi %s741_s12, %s14_s12  }
   0x2   : > { %p141_p1 = scmp.lt.s32.totalorder %s719_s12, 5 }
   0x4   : > { %p142_p2 = pnand %p546_p0, %p141_p1 }
   0x5   : > { %s547_s22 = sshll.u32 (!%p142_p2), %s747_s13, 4  ;;  %p181_p4 = scmp.lt.s32.totalorder (!%p142_p2), %s747_s13, 3 }
   0x6   : > { %145 = sbr.rel (%p142_p2) target bundleno = 235 (0xeb), region = 28  ;;  %p170_p3 = scmp.lt.s32.totalorder (!%p142_p2), %s547_s22, 63 }
   0xb   : > { %v633_v0 = vld [vmem:[%s814_s1 + $0x38] sm:$0xff]  ;;  %v632_v1 = vld [vmem:[%s814_s1 + $0x30] sm:$0xff]  ;;  %v631_v2 = vld [vmem:[%s814_s1 + $0x28] sm:$0xff]  ;;  %s818_s22 = smov (!%p170_p3, %s547_s22), 63  ;;  %s820_s13 = smov (!%p181_p4, %s747_s13), 3  ;;  %vm452_vm0 = vcmask 1040384  }
   0xc   : > { %313 = vmatpush.bf16.msra.mxu0 %v633_v0  ;;  %681 = vmatpush.bf16.msra.mxu1 %v633_v0  ;;  %v630_v3 = vld [vmem:[%s814_s1 + $0x20] sm:$0xff]  ;;  %v629_v4 = vld [vmem:[%s814_s1 + $0x18] sm:$0xff]  ;;  %v628_v5 = vld [vmem:[%s814_s1 + $0x10] sm:$0xff]  ;;  %s548_s29 = sshll.u32 %s818_s22, 2  ;;  %s551_s11 = sshll.u32 %s820_s13, 1 }
   0xd   : > { %682 = vmatpush.bf16.msra.mxu2 %v633_v0  ;;  %683 = vmatpush.bf16.msra.mxu3 %v633_v0  ;;  %v627_v6 = vld [vmem:[%s814_s1 + $0x8] sm:$0xff]  ;;  %v626_v7 = vld [vmem:[%s814_s1] sm:$0xff]  ;;  %s173_s7 = scalar_lea.vmem %s813_s0, %s548_s29  ;;  %s791_s10 = scalar_lea.vmem %s815_s2, %s548_s29 }
   0xe   : > { %v618_v8 = vld [vmem:[%s173_s7] sm:$0xff]  ;;  %v620_v9 = vld [vmem:[%s173_s7 + $0x10] sm:$0xff]  ;;  %v619_v12 = vld [vmem:[%s173_s7 + $0x8] sm:$0xff]  ;;  %s184_s16 = scalar_lea.vmem %s816_s3, %s551_s11 }
   0xf   : > { %v622_v10 = vld [vmem:[%s173_s7 + $0x20] sm:$0xff]  ;;  %v624_v11 = vld [vmem:[%s173_s7 + $0x30] sm:$0xff]  ;;  %v621_v13 = vld [vmem:[%s173_s7 + $0x18] sm:$0xff] }
  0x10   : > { %314 = vmatpush.bf16.msra.mxu0 %v632_v1  ;;  %684 = vmatpush.bf16.msra.mxu1 %v632_v1  ;;  %v623_v14 = vld [vmem:[%s173_s7 + $0x28] sm:$0xff]  ;;  %v625_v15 = vld [vmem:[%s173_s7 + $0x38] sm:$0xff] }
  0x11   : > { %685 = vmatpush.bf16.msra.mxu2 %v632_v1  ;;  %686 = vmatpush.bf16.msra.mxu3 %v632_v1 }
  0x14   : > { %315 = vmatpush.bf16.msra.mxu0 %v631_v2  ;;  %687 = vmatpush.bf16.msra.mxu1 %v631_v2 }
  0x15   : > { %688 = vmatpush.bf16.msra.mxu2 %v631_v2  ;;  %689 = vmatpush.bf16.msra.mxu3 %v631_v2 }
  0x18   : > { %316 = vmatpush.bf16.msra.mxu0 %v630_v3  ;;  %690 = vmatpush.bf16.msra.mxu1 %v630_v3 }
  0x19   : > { %691 = vmatpush.bf16.msra.mxu2 %v630_v3  ;;  %692 = vmatpush.bf16.msra.mxu3 %v630_v3 }
  0x1c   : > { %317 = vmatpush.bf16.msra.mxu0 %v629_v4  ;;  %693 = vmatpush.bf16.msra.mxu1 %v629_v4 }
  0x1d   : > { %694 = vmatpush.bf16.msra.mxu2 %v629_v4  ;;  %695 = vmatpush.bf16.msra.mxu3 %v629_v4 }
  0x20   : > { %318 = vmatpush.bf16.msra.mxu0 %v628_v5  ;;  %696 = vmatpush.bf16.msra.mxu1 %v628_v5 }
  0x21   : > { %697 = vmatpush.bf16.msra.mxu2 %v628_v5  ;;  %698 = vmatpush.bf16.msra.mxu3 %v628_v5 }
  0x24   : > { %319 = vmatpush.bf16.msra.mxu0 %v627_v6  ;;  %699 = vmatpush.bf16.msra.mxu1 %v627_v6 }
  0x25   : > { %700 = vmatpush.bf16.msra.mxu2 %v627_v6  ;;  %701 = vmatpush.bf16.msra.mxu3 %v627_v6 }
  0x28   : > { %320 = vmatpush.bf16.msra.mxu0 %v626_v7  ;;  %702 = vmatpush.bf16.msra.mxu1 %v626_v7 }
  0x29   : > { %703 = vmatpush.bf16.msra.mxu2 %v626_v7  ;;  %704 = vmatpush.bf16.msra.mxu3 %v626_v7 }
  0x2b   : > { %321 = vmatmul.bf16.vlgmr.msra.gmra.mxu0 %v618_v8  ;;  %331 = vmatmul.bf16.vlgmr.msra.gmra.mxu1 %v620_v9 }
  0x2c   : > { %341 = vmatmul.bf16.vlgmr.msra.gmra.mxu2 %v622_v10  ;;  %351 = vmatmul.bf16.vlgmr.msra.gmra.mxu3 %v624_v11 }
  0x3b   : > { %326 = vmatmul.bf16.gmra.mxu0 %v619_v12  ;;  %336 = vmatmul.bf16.gmra.mxu1 %v621_v13 }
  0x3c   : > { %346 = vmatmul.bf16.gmra.mxu2 %v623_v14  ;;  %356 = vmatmul.bf16.gmra.mxu3 %v625_v15 }
  0xa8   : > { %v322_v16 = vpop.f32.mrf.mxu0  ;;  %v332_v17 = vpop.f32.mrf.mxu1 }
  0xa9   : > { %v415_v31 = vmul.f32 %v322_v16, %v322_v16  ;;  %v419_v45 = vmul.f32 %v332_v17, %v332_v17 }
  0xaf   : > { %v342_v18 = vpop.f32.mrf.mxu2  ;;  %v784_v19 = vpop.f32.mrf.mxu3 }
  0xb0   : > { %v324_v20 = vpop.f32.mrf.mxu0  ;;  %v334_v21 = vpop.f32.mrf.mxu1  ;;  %v423_v61 = vmul.f32 %v342_v18, %v342_v18  ;;  %v427_v9 = vmul.f32 %v784_v19, %v784_v19 }
  0xb1   : > { %v637_v22 = vpack.c.bf16 %v324_v20, %v322_v16  ;;  %v647_v23 = vpack.c.bf16 %v334_v21, %v332_v17  ;;  %v416_v30 = vmul.f32 %v324_v20, %v324_v20  ;;  %v394_v33 = vadd.f32 %v324_v20, %v322_v16 }
  0xb2   : > { %v420_v48 = vmul.f32 %v334_v21, %v334_v21 }
  0xb3   : > { %638 = vst [vmem:[%s791_s10] sm:$0xff] %v637_v22   ;;  %v431_v34 = vadd.f32 %v416_v30, %v415_v31 }
  0xb4   : > { %675 = vst [vmem:[%s791_s10 + $0x10] sm:$0xff] %v647_v23  }
  0xb7   : > { %v344_v24 = vpop.f32.mrf.mxu2  ;;  %v354_v25 = vpop.f32.mrf.mxu3 }
  0xb8   : > { %v327_v26 = vpop.f32.mrf.mxu0  ;;  %v337_v27 = vpop.f32.mrf.mxu1  ;;  %v657_v28 = vpack.c.bf16 %v344_v24, %v342_v18  ;;  %v667_v29 = vpack.c.bf16 %v354_v25, %v784_v19  ;;  %v424_v0 = vmul.f32 %v344_v24, %v344_v24  ;;  %v428_v12 = vmul.f32 %v354_v25, %v354_v25 }
  0xb9   : > { %v417_v32 = vmul.f32 %v327_v26, %v327_v26  ;;  %v395_v35 = vadd.f32 %v394_v33, %v327_v26  ;;  %v421_v51 = vmul.f32 %v337_v27, %v337_v27 }
  0xba   : > { %677 = vst [vmem:[%s791_s10 + $0x20] sm:$0xff] %v657_v28  }
  0xbb   : > { %679 = vst [vmem:[%s791_s10 + $0x30] sm:$0xff] %v667_v29   ;;  %v432_v38 = vadd.f32 %v431_v34, %v417_v32 }
  0xbf   : > { %v347_v36 = vpop.f32.mrf.mxu2  ;;  %v357_v37 = vpop.f32.mrf.mxu3 }
  0xc0   : > { %v329_v39 = vpop.f32.mrf.mxu0  ;;  %v339_v40 = vpop.f32.mrf.mxu1  ;;  %v425_v4 = vmul.f32 %v347_v36, %v347_v36  ;;  %v429_v16 = vmul.f32 %v357_v37, %v357_v37 }
  0xc1   : > { %v642_v41 = vpack.c.bf16 %v329_v39, %v327_v26  ;;  %v396_v42 = vadd.f32 %v395_v35, %v329_v39  ;;  %v418_v43 = vmul.f32 %v329_v39, %v329_v39  ;;  %v652_v44 = vpack.c.bf16 %v339_v40, %v337_v27 }
  0xc2   : > { %v422_v59 = vmul.f32 %v339_v40, %v339_v40 }
  0xc3   : > { %674 = vst [vmem:[%s791_s10 + $0x8] sm:$0xff] %v642_v41   ;;  %v397_v46 = vadd.f32 %v396_v42, %v332_v17  ;;  %v433_v47 = vadd.f32 %v432_v38, %v418_v43 }
  0xc4   : > { %676 = vst [vmem:[%s791_s10 + $0x18] sm:$0xff] %v652_v44  }
  0xc5   : > { %v434_v49 = vadd.f32 %v433_v47, %v419_v45  ;;  %v398_v50 = vadd.f32 %v397_v46, %v334_v21 }
  0xc7   : > { %v399_v52 = vadd.f32 %v398_v50, %v337_v27  ;;  %v435_v53 = vadd.f32 %v434_v49, %v420_v48  ;;  %v349_v54 = vpop.f32.mrf.mxu2  ;;  %v359_v55 = vpop.f32.mrf.mxu3 }
  0xc8   : > { %v662_v56 = vpack.c.bf16 %v349_v54, %v347_v36  ;;  %v672_v57 = vpack.c.bf16 %v359_v55, %v357_v37  ;;  %v426_v8 = vmul.f32 %v349_v54, %v349_v54  ;;  %v430_v21 = vmul.f32 %v359_v55, %v359_v55 }
  0xc9   : > { %v400_v58 = vadd.f32 %v399_v52, %v339_v40  ;;  %v436_v60 = vadd.f32 %v435_v53, %v421_v51 }
  0xca   : > { %678 = vst [vmem:[%s791_s10 + $0x28] sm:$0xff] %v662_v56  }
  0xcb   : > { %v401_v62 = vadd.f32 %v400_v58, %v342_v18  ;;  %v437_v63 = vadd.f32 %v436_v60, %v422_v59  ;;  %680 = vst [vmem:[%s791_s10 + $0x38] sm:$0xff] %v672_v57  }
  0xcd   : > { %v438_v1 = vadd.f32 %v437_v63, %v423_v61  ;;  %v402_v2 = vadd.f32 %v401_v62, %v344_v24 }
  0xcf   : > { %v403_v3 = vadd.f32 %v402_v2, %v347_v36  ;;  %v439_v5 = vadd.f32 %v438_v1, %v424_v0 }
  0xd1   : > { %v440_v6 = vadd.f32 %v439_v5, %v425_v4  ;;  %v404_v7 = vadd.f32 %v403_v3, %v349_v54 }
  0xd3   : > { %v405_v10 = vadd.f32 %v404_v7, %v784_v19  ;;  %v441_v11 = vadd.f32 %v440_v6, %v426_v8 }
  0xd5   : > { %v442_v13 = vadd.f32 %v441_v11, %v427_v9  ;;  %v406_v14 = vadd.f32 %v405_v10, %v354_v25 }
  0xd7   : > { %v407_v15 = vadd.f32 %v406_v14, %v357_v37  ;;  %v443_v17 = vadd.f32 %v442_v13, %v428_v12 }
  0xd9   : > { %v444_v18 = vadd.f32 %v443_v17, %v429_v16  ;;  %v408_v20 = vadd.f32 %v407_v15, %v359_v55 }
  0xdb   : > { %v409_v22 = vrot.slane %v408_v20, 4  ;;  %v445_v23 = vadd.f32 %v444_v18, %v430_v21 }
  0xdd   : > { %v410_v24 = vadd.f32 %v409_v22, %v408_v20  ;;  %v446_v26 = vrot.slane %v445_v23, 4 }
  0xdf   : > { %v411_v27 = vrot.slane %v410_v24, 2  ;;  %v447_v28 = vadd.f32 %v446_v26, %v445_v23 }
  0xe1   : > { %v412_v19 = vadd.f32 %v411_v27, %v410_v24  ;;  %v448_v29 = vrot.slane %v447_v28, 2 }
  0xe3   : > { %v413_v30 = vrot.slane %v412_v19, 1  ;;  %v449_v31 = vadd.f32 %v448_v29, %v447_v28 }
  0xe5   : > { %v450_v25 = vrot.slane %v449_v31, 1  ;;  %v414_v32 = vadd.f32 %v413_v30, %v412_v19 }
  0xe7   : > { %v451_v33 = vadd.f32 %v450_v25, %v449_v31 }
  0xe9   : > { %v453_v34 = vsel %vm452_vm0, %v414_v32, %v451_v33 }
  0xea   : > { %454 = vst [vmem:[%s184_s16] sm:$0x3] %v453_v34 }
  0xeb PF: > { %s14_s12 = sadd.s32 1, %s719_s12  }
  0xec   : > { %p11_p5 = scmp.ge.s32.totalorder %s14_s12, 6  }
  0xee   :  { %13 = sbr.rel (!%p11_p5) target bundleno = 1 (0x1), region = 70 }

</bundles_post_ra>
